<compile_context>
chip_gen: v7x
topology: tpu7x:2x2x1
jax: 0.10.0
libtpu: 0.0.40
codegen_flags: <defaults>
</compile_context>

<pallas_src>
import jax
import jax.numpy as jnp
from jax import lax
from jax.experimental import pallas as pl
from jax.experimental.pallas import tpu as pltpu

BN_EPS = 1e-5
_VMEM_LIMIT = 32 * 1024 * 1024  # explicit scoped-VMEM budget; safe on v5e/v6e/v7x


def _conv_stats_kernel(x_ref, w_ref, b_ref, y_ref, s_ref):
    """Per-image conv (KH banded matmuls) + bias + partial BN statistics.

    x_ref: (1, Hp, Wp*Cin)       padded input, W and Cin folded onto lanes
    w_ref: (KH, Wp*Cin, W*Cout)  banded conv weight (kw, cin taps fused)
    b_ref: (1, W*Cout)           conv bias broadcast over W
    y_ref: (1, H, W*Cout)        conv output slab (lane-dense)
    s_ref: (1, 2, W*Cout)        per-block [sum; sum-of-squares] over rows
    """
    KH = w_ref.shape[0]
    H = y_ref.shape[1]
    x = x_ref[0]                                   # (Hp, Wp*Cin), loaded once

    acc = jnp.zeros((H, y_ref.shape[2]), jnp.float32)
    # KH matmuls, each with contraction K = Wp*Cin (kw and cin fused).
    # TODO(synk): cast matmul operands to bf16 for realistic (>=128) channel
    # counts where this is MXU-bound; kept f32 here to hold 1e-4 accuracy.
    for kh in range(KH):                           # static unroll (KH = 3)
        acc = acc + jnp.dot(x[kh:kh + H, :], w_ref[kh],
                            preferred_element_type=jnp.float32)
    acc = acc + b_ref[...]                         # broadcast (1, W*Cout)

    y_ref[0] = acc.astype(y_ref.dtype)
    srow = jnp.sum(acc, axis=0, keepdims=True)           # (1, W*Cout)
    qrow = jnp.sum(acc * acc, axis=0, keepdims=True)     # (1, W*Cout)
    s_ref[0] = jnp.concatenate([srow, qrow], axis=0)     # (2, W*Cout)


def _bn_relu_kernel(y_ref, aff_ref, o_ref):
    """Folded BN affine + ReLU: o = max(y * scale + shift, 0)."""
    scale = aff_ref[0:1, :]                        # (1, W*Cout)
    shift = aff_ref[1:2, :]
    o_ref[0] = jnp.maximum(y_ref[0] * scale + shift, 0.0).astype(o_ref.dtype)


def _build_banded_weight(weight_oihw, W, pad):
    """OIHW conv weight -> banded (KH, Wp*Cin, W*Cout) matrices.

    w_band[kh, p*Cin + ci, w*Cout + co] = weight[co, ci, kh, kw]  iff p == w + kw.
    Built once per weight (would be cached at module init in a real pipeline).
    """
    Cout, Cin, KH, KW = weight_oihw.shape
    Wp = W + 2 * pad
    w_hwio = jnp.transpose(weight_oihw, (2, 3, 1, 0))          # (KH, KW, Cin, Cout)
    sel = (jnp.arange(Wp)[None, :, None]
           == (jnp.arange(W)[:, None, None] + jnp.arange(KW)[None, None, :]))
    sel = sel.astype(w_hwio.dtype)                              # (W, Wp, KW)
    w_band = jnp.einsum('wpk,hkio->hpiwo', sel, w_hwio)         # (KH,Wp,Cin,W,Cout)
    return w_band.reshape(KH, Wp * Cin, W * Cout)


def dconv_forward(x_nchw, weight_oihw, bias, gamma, beta, stride=(1, 1)):
    """Pallas DConv forward. x_nchw: (N, Cin, H, W) -> (N, Cout, H, W)."""
    assert stride == (1, 1), "kernel implemented for stride (1, 1)"
    N, Cin, H, W = x_nchw.shape
    Cout, _, KH, KW = weight_oihw.shape
    pad = 1 if KH == 3 else 2                 # matches the module's padding rule
    Hp, Wp = H + 2 * pad, W + 2 * pad
    WC_in, WC_out = Wp * Cin, W * Cout
    f32 = jnp.float32

    # Layout prep. A real pipeline would keep NHWC end-to-end and pre-build the
    # banded weight once at init; the transposes here only exist to match the
    # PyTorch NCHW API boundary.
    # TODO(synk): fold the zero padding into the kernel (index_map edge handling)
    # to avoid this extra wrapper HBM pass for large inputs.
    x_nhwc = jnp.transpose(x_nchw, (0, 2, 3, 1)).astype(f32)
    x_pad = jnp.pad(x_nhwc, ((0, 0), (pad, pad), (pad, pad), (0, 0)))
    x3 = x_pad.reshape(N, Hp, WC_in)
    w_band = _build_banded_weight(weight_oihw.astype(f32), W, pad)
    bias_row = jnp.tile(bias.astype(f32), W).reshape(1, WC_out)

    cparams = pltpu.CompilerParams(
        dimension_semantics=("parallel",),    # megacore-shardable grid (v7x)
        vmem_limit_bytes=_VMEM_LIMIT)

    # ---- pass 1: conv + bias + per-block partial BN stats -------------------
    conv_slab, stats = pl.pallas_call(
        _conv_stats_kernel,
        out_shape=(jax.ShapeDtypeStruct((N, H, WC_out), f32),
                   jax.ShapeDtypeStruct((N, 2, WC_out), f32)),
        grid=(N,),
        in_specs=[
            pl.BlockSpec((1, Hp, WC_in), lambda i: (i, 0, 0)),
            pl.BlockSpec((KH, WC_in, WC_out), lambda i: (0, 0, 0)),
            pl.BlockSpec((1, WC_out), lambda i: (0, 0)),
        ],
        out_specs=(
            pl.BlockSpec((1, H, WC_out), lambda i: (i, 0, 0)),
            pl.BlockSpec((1, 2, WC_out), lambda i: (i, 0, 0)),
        ),
        compiler_params=cparams,
    )(x3, w_band, bias_row)

    # ---- fold BN into per-channel scale/shift (tiny reduction, outside kernel)
    s = jnp.sum(stats, axis=0)                            # (2, W*Cout)
    cnt = jnp.float32(N * H * W)
    sum_c = s[0].reshape(W, Cout).sum(axis=0)             # (Cout,)
    sq_c = s[1].reshape(W, Cout).sum(axis=0)
    mean = sum_c / cnt
    var = jnp.maximum(sq_c / cnt - mean * mean, 0.0)      # biased var (BN train)
    scale = gamma.astype(f32) * lax.rsqrt(var + BN_EPS)
    shift = beta.astype(f32) - mean * scale
    affine = jnp.stack([jnp.tile(scale, W), jnp.tile(shift, W)], axis=0)  # (2, WC)

    # ---- pass 2: normalize + affine + ReLU ----------------------------------
    out_slab = pl.pallas_call(
        _bn_relu_kernel,
        out_shape=jax.ShapeDtypeStruct((N, H, WC_out), x_nchw.dtype),
        grid=(N,),
        in_specs=[
            pl.BlockSpec((1, H, WC_out), lambda i: (i, 0, 0)),
            pl.BlockSpec((2, WC_out), lambda i: (0, 0)),
        ],
        out_specs=pl.BlockSpec((1, H, WC_out), lambda i: (i, 0, 0)),
        compiler_params=cparams,
    )(conv_slab, affine)

    # lane-dense slab -> NCHW to match the PyTorch-style API
    return jnp.transpose(out_slab.reshape(N, H, W, Cout), (0, 3, 1, 2))


def _reference(x_nchw, weight_oihw, bias, gamma, beta):
    """Pure-JAX reference matching PyTorch Conv2d + BatchNorm2d(train) + ReLU."""
    y = lax.conv_general_dilated(
        x_nchw, weight_oihw, window_strides=(1, 1), padding=((1, 1), (1, 1)),
        dimension_numbers=("NCHW", "OIHW", "NCHW"))
    y = y + bias[None, :, None, None]
    mean = jnp.mean(y, axis=(0, 2, 3), keepdims=True)
    var = jnp.mean((y - mean) ** 2, axis=(0, 2, 3), keepdims=True)
    y = (y - mean) * lax.rsqrt(var + BN_EPS)
    y = y * gamma[None, :, None, None] + beta[None, :, None, None]
    return jnp.maximum(y, 0.0)


if __name__ == "__main__":
    # Small shapes consistent with the module: input_channels=4, output_channels=8,
    # fbins=16 (H), time=16 (W), kernel_size=3, stride=(1, 1).
    N, Cin, Cout, H, W, K = 2, 4, 8, 16, 16, 3

    key = jax.random.PRNGKey(0)
    kx, kw, kb, kg, kbe = jax.random.split(key, 5)

    x = jax.random.normal(kx, (N, Cin, H, W), jnp.float32)
    weight = 0.1 * jax.random.normal(kw, (Cout, Cin, K, K), jnp.float32)  # Conv2d.weight
    bias = 0.1 * jax.random.normal(kb, (Cout,), jnp.float32)              # Conv2d.bias
    gamma = 1.0 + 0.1 * jax.random.normal(kg, (Cout,), jnp.float32)       # BN.weight
    beta = 0.1 * jax.random.normal(kbe, (Cout,), jnp.float32)             # BN.bias

    out = dconv_forward(x, weight, bias, gamma, beta)
    out = jax.block_until_ready(out)

    ref = _reference(x, weight, bias, gamma, beta)
    assert out.shape == (N, Cout, H, W)
    assert jnp.allclose(out, ref, atol=1e-4, rtol=1e-4), \
        f"max abs err {jnp.max(jnp.abs(out - ref))}"

    print("KERNEL_OK")
</pallas_src>

<mosaic_0001>
module attributes {stable_mosaic.version = 11 : i64} {
  func.func @_conv_stats_kernel(%arg0: i32, %arg1: memref<1x18x72xf32, #tpu.memory_space<vmem>>, %arg2: memref<3x72x128xf32, #tpu.memory_space<vmem>>, %arg3: memref<1x128xf32, #tpu.memory_space<vmem>>, %arg4: memref<1x16x128xf32, #tpu.memory_space<vmem>>, %arg5: memref<1x2x128xf32, #tpu.memory_space<vmem>>) attributes {dimension_semantics = [#tpu.dimension_semantics<parallel>], iteration_bounds = array<i64: 2>, scalar_prefetch = 0 : i64, scratch_operands = 0 : i64, tpu.core_type = #tpu.core_type<tc>, window_params = [{transform_indices = @transform_0, window_bounds = array<i64: 1, 18, 72>}, {pipeline_mode = #tpu.pipeline_mode<synchronous>, transform_indices = @transform_1, window_bounds = array<i64: 3, 72, 128>}, {pipeline_mode = #tpu.pipeline_mode<synchronous>, transform_indices = @transform_2, window_bounds = array<i64: 1, 128>}, {transform_indices = @transform_3, window_bounds = array<i64: 1, 16, 128>}, {transform_indices = @transform_4, window_bounds = array<i64: 1, 2, 128>}]} {
    %c0 = arith.constant 0 : index
    %c0_0 = arith.constant 0 : index
    %c0_1 = arith.constant 0 : index
    %0 = vector.load %arg1[%c0, %c0_0, %c0_1] : memref<1x18x72xf32, #tpu.memory_space<vmem>>, vector<1x18x72xf32>
    %1 = vector.shape_cast %0 : vector<1x18x72xf32> to vector<18x72xf32>
    %cst = arith.constant 0.000000e+00 : f32
    %2 = vector.broadcast %cst : f32 to vector<16x128xf32>
    %3 = vector.extract_strided_slice %1 {offsets = [0, 0], sizes = [16, 72], strides = [1, 1]} : vector<18x72xf32> to vector<16x72xf32>
    %c0_2 = arith.constant 0 : index
    %c0_3 = arith.constant 0 : index
    %c0_4 = arith.constant 0 : index
    %4 = vector.load %arg2[%c0_2, %c0_3, %c0_4] : memref<3x72x128xf32, #tpu.memory_space<vmem>>, vector<1x72x128xf32>
    %5 = vector.shape_cast %4 : vector<1x72x128xf32> to vector<72x128xf32>
    %cst_5 = arith.constant dense<0.000000e+00> : vector<16x128xf32>
    %6 = tpu.matmul %3, %5, %cst_5 {dimension_numbers = #tpu.dot_dimension_numbers<[1], [0], [0], [1], [0, 0, 1, 1], [], []>} : vector<16x72xf32>, vector<72x128xf32>, vector<16x128xf32> -> vector<16x128xf32>
    %7 = arith.addf %2, %6 : vector<16x128xf32>
    %8 = vector.extract_strided_slice %1 {offsets = [1, 0], sizes = [16, 72], strides = [1, 1]} : vector<18x72xf32> to vector<16x72xf32>
    %c1 = arith.constant 1 : index
    %c0_6 = arith.constant 0 : index
    %c0_7 = arith.constant 0 : index
    %9 = vector.load %arg2[%c1, %c0_6, %c0_7] : memref<3x72x128xf32, #tpu.memory_space<vmem>>, vector<1x72x128xf32>
    %10 = vector.shape_cast %9 : vector<1x72x128xf32> to vector<72x128xf32>
    %cst_8 = arith.constant dense<0.000000e+00> : vector<16x128xf32>
    %11 = tpu.matmul %8, %10, %cst_8 {dimension_numbers = #tpu.dot_dimension_numbers<[1], [0], [0], [1], [0, 0, 1, 1], [], []>} : vector<16x72xf32>, vector<72x128xf32>, vector<16x128xf32> -> vector<16x128xf32>
    %12 = arith.addf %7, %11 : vector<16x128xf32>
    %13 = vector.extract_strided_slice %1 {offsets = [2, 0], sizes = [16, 72], strides = [1, 1]} : vector<18x72xf32> to vector<16x72xf32>
    %c2 = arith.constant 2 : index
    %c0_9 = arith.constant 0 : index
    %c0_10 = arith.constant 0 : index
    %14 = vector.load %arg2[%c2, %c0_9, %c0_10] : memref<3x72x128xf32, #tpu.memory_space<vmem>>, vector<1x72x128xf32>
    %15 = vector.shape_cast %14 : vector<1x72x128xf32> to vector<72x128xf32>
    %cst_11 = arith.constant dense<0.000000e+00> : vector<16x128xf32>
    %16 = tpu.matmul %13, %15, %cst_11 {dimension_numbers = #tpu.dot_dimension_numbers<[1], [0], [0], [1], [0, 0, 1, 1], [], []>} : vector<16x72xf32>, vector<72x128xf32>, vector<16x128xf32> -> vector<16x128xf32>
    %17 = arith.addf %12, %16 : vector<16x128xf32>
    %c0_12 = arith.constant 0 : index
    %c0_13 = arith.constant 0 : index
    %18 = vector.load %arg3[%c0_12, %c0_13] : memref<1x128xf32, #tpu.memory_space<vmem>>, vector<1x128xf32>
    %19 = vector.broadcast %18 : vector<1x128xf32> to vector<16x128xf32>
    %20 = arith.addf %17, %19 : vector<16x128xf32>
    %c0_14 = arith.constant 0 : index
    %c0_15 = arith.constant 0 : index
    %c0_16 = arith.constant 0 : index
    %21 = vector.load %arg4[%c0_14, %c0_15, %c0_16] : memref<1x16x128xf32, #tpu.memory_space<vmem>>, vector<1x16x128xf32>
    %22 = vector.shape_cast %21 : vector<1x16x128xf32> to vector<16x128xf32>
    %23 = vector.shape_cast %20 : vector<16x128xf32> to vector<1x16x128xf32>
    tpu.vector_store %arg4[%c0_14, %c0_15, %c0_16], %23 {strides = array<i32>} : memref<1x16x128xf32, #tpu.memory_space<vmem>>, vector<1x16x128xf32>,
    %cst_17 = arith.constant dense<0.000000e+00> : vector<128xf32>
    %24 = vector.multi_reduction <add>, %20, %cst_17 [0] : vector<16x128xf32> to vector<128xf32>
    %25 = vector.shape_cast %24 : vector<128xf32> to vector<1x128xf32>
    %26 = arith.mulf %20, %20 : vector<16x128xf32>
    %cst_18 = arith.constant dense<0.000000e+00> : vector<128xf32>
    %27 = vector.multi_reduction <add>, %26, %cst_18 [0] : vector<16x128xf32> to vector<128xf32>
    %28 = vector.shape_cast %27 : vector<128xf32> to vector<1x128xf32>
    %29 = tpu.concatenate %25, %28 in 0 : vector<1x128xf32>, vector<1x128xf32> -> vector<2x128xf32>
    %c0_19 = arith.constant 0 : index
    %c0_20 = arith.constant 0 : index
    %c0_21 = arith.constant 0 : index
    %30 = vector.load %arg5[%c0_19, %c0_20, %c0_21] : memref<1x2x128xf32, #tpu.memory_space<vmem>>, vector<1x2x128xf32>
    %31 = vector.shape_cast %30 : vector<1x2x128xf32> to vector<2x128xf32>
    %32 = vector.shape_cast %29 : vector<2x128xf32> to vector<1x2x128xf32>
    tpu.vector_store %arg5[%c0_19, %c0_20, %c0_21], %32 {strides = array<i32>} : memref<1x2x128xf32, #tpu.memory_space<vmem>>, vector<1x2x128xf32>,
    return
  }
  func.func @transform_0(%arg0: i32) -> (i32, i32, i32) {
    %c0_i32 = arith.constant 0 : i32
    %c0_i32_0 = arith.constant 0 : i32
    %c0_i32_1 = arith.constant 0 : i32
    return %arg0, %c0_i32, %c0_i32_0 : i32, i32, i32
  }
  func.func @transform_1(%arg0: i32) -> (i32, i32, i32) {
    %c0_i32 = arith.constant 0 : i32
    %c0_i32_0 = arith.constant 0 : i32
    %c0_i32_1 = arith.constant 0 : i32
    %c0_i32_2 = arith.constant 0 : i32
    return %c0_i32, %c0_i32_0, %c0_i32_1 : i32, i32, i32
  }
  func.func @transform_2(%arg0: i32) -> (i32, i32) {
    %c0_i32 = arith.constant 0 : i32
    %c0_i32_0 = arith.constant 0 : i32
    %c0_i32_1 = arith.constant 0 : i32
    return %c0_i32, %c0_i32_0 : i32, i32
  }
  func.func @transform_3(%arg0: i32) -> (i32, i32, i32) {
    %c0_i32 = arith.constant 0 : i32
    %c0_i32_0 = arith.constant 0 : i32
    %c0_i32_1 = arith.constant 0 : i32
    return %arg0, %c0_i32, %c0_i32_0 : i32, i32, i32
  }
  func.func @transform_4(%arg0: i32) -> (i32, i32, i32) {
    %c0_i32 = arith.constant 0 : i32
    %c0_i32_0 = arith.constant 0 : i32
    %c0_i32_1 = arith.constant 0 : i32
    return %arg0, %c0_i32, %c0_i32_0 : i32, i32, i32
  }
}

</mosaic_0001>

<bundles_post_ra>
// kernel: tpu_custom_call.1
= control target key start
LH: loop header
LB: loop body
LE: loop exit
PB: predicated region body
PF: predicated region fallthrough
CT: control target
= control target key end

     0   :  { %10 = vsyncpa [#allocation3], 0  ;;  %s1264_s0 = inlined_call_operand.vmem [shape: f32[2,18,72], index: 0, kind: input, shape index: {}]   ;;  %s1265_s1 = inlined_call_operand.hbm [shape: f32[3,72,128], index: 1, kind: input, shape index: {}]   ;;  %s1266_s2 = inlined_call_operand.vmem [shape: f32[1,128], index: 2, kind: input, shape index: {}]   ;;  %s1267_s3 = inlined_call_operand.hbm [shape: f32[2,16,128], index: 3, kind: output, shape index: {0}]   ;;  %s1268_s4 = inlined_call_operand.hbm [shape: f32[2,2,128], index: 4, kind: output, shape index: {1}]  }
   0x1   :  { %11 = vsyncpa [#allocation4], 0 }
   0x2   :  { %13 = vsyncpa [#allocation4 + $0x1], 0 }
   0x3   :  { %14 = vsyncpa [#allocation7], 0 }
   0x4   :  { %16 = vsyncpa [#allocation7 + $0x1], 0  ;;  %s1069_s15 = smov 0   ;;  %s1071_s16 = smov 0  }
   0x5   :  { %s1073_s17 = smov 0   ;;  %s1075_s18 = smov 0  }
   0x6 LB: > { %s1090_s19 = sadd.s32 4294967295, %s1035_s18   ;;  %s677_s20 = sadd.s32 4294967294, %s1035_s18   ;;  %s1035_s18 = sphi %s1075_s18, %s1284_s18   ;;  %s1031_s17 = sphi %s1073_s17, %s1283_s17   ;;  %s1027_s16 = sphi %s1071_s16, %s1282_s16   ;;  %s1023_s15 = sphi %s1069_s15, %s1281_s15  }
   0x7   : > { %s1094_s21 = sadd.s32 1, %s1035_s18   ;;  %s97_s22 = sadd.s32 1, %s1031_s17 }
   0x8   : > { %s94_s23 = ssub.s32 %s1035_s18, %s1094_s21  ;;  %p107_p0 = scmp.ne.s32.totalorder %s1031_s17, %s1027_s16 }
   0x9   : > { %p95_p1 = scmp.eq.s32.totalorder %s94_s23, 0  ;;  %p108_p2 = scmp.eq.s32.totalorder %s1090_s19, 1 }
   0xa   : > { %p113_p3 = scmp.ne.s32.totalorder %s1027_s16, %s1023_s15  ;;  %p114_p4 = scmp.eq.s32.totalorder %s677_s20, 1 }
   0xb   : > { %s1105_s24 = scalar_select %p95_p1, %s1031_s17, %s97_s22  }
   0xc   : > { %p1107_p5 = por %p108_p2, %p107_p0  ;;  %p1111_p6 = por %p114_p4, %p113_p3 }
   0xd   : > { %p678_p7 = scmp.ge.s32.totalorder %s1035_s18, 1  ;;  %p147_p8 = scmp.lt.s32.totalorder %s1035_s18, 3 }
   0xe   : > { %s1272_s25 = scalar_select %p1107_p5, 1, 0 }
   0xf   : > { %s1273_s26 = scalar_select %p1111_p6, 1, 0 }
  0x10   : > { %p1269_p9 = scmp.eq.s32.totalorder %s1090_s19, 0  ;;  %p1118_p10 = pnand %p678_p7, %p147_p8 }
  0x11   : > { %s1037_s28 = smov [#allocation2]   ;;  %s909_s7 = scalar_lea.hbm %s1265_s1, 3456 }
  0x12   : > { %s1274_s27 = scalar_select %p1118_p10, 1, 0 }
  0x13   : > { %s159_s29 = sshll.u32 %s1037_s28, 4  ;;  %p858_p11 = pneg %p1118_p10  ;;  %s160_s29 = int_to_ptr.vmem [resolvable:$true] %s159_s29 }
  0x14   : > { %p910_p13 = scmp.ne.s32.totalorder %s1265_s1, %s909_s7  ;;  %p916_p3 = scmp.lt.u32.totalorder %s909_s7, %s1265_s1 }
  0x15   : > { %p1126_p12 = pnand %p1269_p9, %p858_p11 }
  0x17   : > { %p911_p0 = pneg %p1126_p12 }
  0x19   : > { %p912_p1 = pnand %p911_p0, %p910_p13 }
  0x1b   : > { %p913_p2 = pneg %p912_p1 }
  0x1d   : > { %p918_p4 = pnand %p916_p3, %p913_p2 }
  0x1f   : > { %921 = shalt.err (!%p918_p4)
}
  0x20   : > { %s922_s12 = scalar_lea.vmem %s160_s29, 3456  ;;  %p930_p9 = scmp.lt.s32.totalorder %s160_s29, %s160_s29 }
  0x21   : > { %p923_p7 = scmp.ne.s32.totalorder %s160_s29, %s922_s12  ;;  %p931_p6 = scmp.lt.s32.totalorder %s922_s12, %s922_s12 }
  0x23   : > { %p925_p8 = pnand %p923_p7, %p911_p0  ;;  %p932_p5 = por %p931_p6, %p930_p9 }
  0x25   : > { %p926_p11 = pneg %p925_p8 }
  0x27   : > { %p933_p10 = pnand %p932_p5, %p926_p11 }
  0x29   : > { %936 = shalt.err (!%p933_p10)
}
  0x2a   : > { %s1038_s13 = smov 128   ;;  %s1039_s14 = smov 8  }
  0x2b   : > { %861 = dma.hbm_to_vmem [thread:$0]  (!%p1126_p12), %s1265_s1, 3456, %s160_s29, [#allocation3], %s1038_s13, %s1038_s13, %s1039_s14  }
  0x2c   : > { %p1276_p13 = scmp.ne.s32.totalorder %s1274_s27, 0 }
  0x2d   : > { %p1277_p1 = scmp.eq.s32.totalorder (!%p1276_p13), %s1090_s19, 0 }
  0x2e   : > { %186 = sbr.rel (%p1276_p13) target bundleno = 352 (0x160), region = 32 }
  0x35   : > { %1010 = dma.done.wait (%p1277_p1), [#allocation3], 3456   ;;  %p1278_p0 = pmov %p1277_p1 }
  0x36   : > { %p217_p5 = scmp.lt.s32.totalorder %s1090_s19, 1  ;;  %v225_v0 = vld [vmem:[#allocation2] sm:$0xff]  ;;  %v226_v1 = vld [vmem:[#allocation2 + $0x8] sm:$0xff]  ;;  %v227_v2 = vld [vmem:[#allocation2 + $0x10] sm:$0xff]  ;;  %vm253_vm0 = vcmask 588800   ;;  %vm247_vm1 = vcmask 1046528  }
  0x37   : > { %1012 = vsyncadd (%p1278_p0), [#allocation3], 4294963840  ;;  %v813_v3 = vpack.c.bf16 %v226_v1, %v225_v0  ;;  %v228_v4 = vld [vmem:[#allocation2 + $0x18] sm:$0xff]  ;;  %v229_v6 = vld [vmem:[#allocation2 + $0x20] sm:$0xff]  ;;  %vm422_vm2 = vcmask 1045504   ;;  %s1178_s27 = sand.u32 1, %s1027_s16  }
  0x38   : > { %s218_s23 = scalar_select %p217_p5, %s1090_s19, 1  ;;  %v817_v5 = vpack.c.bf16 %v228_v4, %v227_v2  ;;  %v230_v7 = vld [vmem:[#allocation2 + $0x28] sm:$0xff]  ;;  %v236_v9 = vld [vmem:[#allocation2 + $0x50] sm:$0xff]  ;;  %v237_v15 = vld [vmem:[#allocation2 + $0x58] sm:$0xff] }
  0x39   : > { %814 = vmatprep.subr.bf16.mxu0 %v813_v3  ;;  %v235_v8 = vld [vmem:[#allocation2 + $0x48] sm:$0xff]  ;;  %v821_v13 = vpack.c.bf16 %v230_v7, %v229_v6  ;;  %v238_v16 = vld [vmem:[#allocation2 + $0x60] sm:$0xff]  ;;  %v231_v17 = vld [vmem:[#allocation2 + $0x30] sm:$0xff]  ;;  %s683_s6 = sshll.u32 %s1178_s27, 4  ;;  %s700_s11 = sshll.u32 %s1090_s19, 8 }
  0x3a   : > { %s849_s28 = smul.u32 24, %s218_s23  ;;  %816 = vmatpush3.bf16.msra.mxu0 %v813_v3  ;;  %v797_v11 = vpack.c.bf16 %v236_v9, %v235_v8  ;;  %v232_v18 = vld [vmem:[#allocation2 + $0x38] sm:$0xff]  ;;  %v801_v19 = vpack.c.bf16 %v238_v16, %v237_v15  ;;  %v239_v20 = vld [vmem:[#allocation2 + $0x68] sm:$0xff]  ;;  %v240_v22 = vld [vmem:[#allocation2 + $0x70] sm:$0xff]  ;;  %s209_s7 = scalar_lea.vmem [#allocation5], %s683_s6 }
  0x3b   : > { %818 = vmatprep.subr.bf16.mxu0 %v817_v5  ;;  %v805_v23 = vpack.c.bf16 %v240_v22, %v239_v20  ;;  %v825_v25 = vpack.c.bf16 %v232_v18, %v231_v17  ;;  %v241_v26 = vld [vmem:[#allocation2 + $0x78] sm:$0xff]  ;;  %v242_v27 = vld [vmem:[#allocation2 + $0x80] sm:$0xff]  ;;  %v413_v31 = vld [vmem:[#allocation2 + $0x90] sm:$0xff]  ;;  %s558_s8 = sshll.u32 %s209_s7, 4  ;;  %s1190_s14 = scalar_lea.hbm %s1267_s3, %s700_s11  ;;  %s1185_s8 = int_to_ptr.vmem [resolvable:$true] %s558_s8 }
  0x3c   : > { %s1157_s29 = scalar_lea.vmem %s1264_s0, %s849_s28  ;;  %798 = vmatprep.subr.bf16.mxu1 %v797_v11  ;;  %v809_v28 = vpack.c.bf16 %v242_v27, %v241_v26  ;;  %v233_v29 = vld [vmem:[#allocation2 + $0x40] sm:$0xff]  ;;  %v414_v32 = vld [vmem:[#allocation2 + $0x98] sm:$0xff]  ;;  %v416_v36 = vld [vmem:[#allocation2 + $0xa8] sm:$0xff]  ;;  %s540_s20 = scalar_lea.sflag [#allocation4], %s1178_s27 }
  0x3d   : > { %v222_v10 = vld [vmem:[%s1157_s29] sm:$0xff]  ;;  %v1162_v14 = vld [vmem:[%s1157_s29 + $0x8] sm:$0xff]  ;;  %800 = vmatpush3.bf16.msra.mxu1 %v797_v11  ;;  %v224_v30 = vld [vmem:[%s1157_s29 + $0x10] sm:$0x3]  ;;  %v829_v38 = vpack.c.bf16 %v414_v32, %v413_v31  ;;  %s937_s22 = scalar_lea.vmem %s1185_s8, 256  ;;  %p1279_p9 = scmp.ne.s32.totalorder %s1272_s25, 0 }
  0x3e   : > { %v248_v12 = vrot.slane %v222_v10, 1  ;;  %773 = vmatprep.mubr.msk.f32.mxu0 %vm253_vm0, %v222_v10  ;;  %v249_v21 = vrot.slane %v1162_v14, 1  ;;  %820 = vmatpush3.bf16.msra.mxu0 %v817_v5  ;;  %v423_v33 = vrot.slane %v222_v10, 2  ;;  %v424_v34 = vrot.slane %v1162_v14, 2  ;;  %v415_v35 = vld [vmem:[#allocation2 + $0xa0] sm:$0xff]  ;;  %v243_v39 = vld [vmem:[#allocation2 + $0x88] sm:$0xff]  ;;  %p938_p6 = scmp.ne.s32.totalorder %s1185_s8, %s937_s22 }
  0x3f   : > { %802 = vmatprep.subr.bf16.mxu1 %v801_v19  ;;  %822 = vmatprep.subr.bf16.mxu0 %v821_v13  ;;  %v251_v37 = vrot.slane %v224_v30, 1  ;;  %v833_v40 = vpack.c.bf16 %v416_v36, %v415_v35  ;;  %v417_v42 = vld [vmem:[#allocation2 + $0xb0] sm:$0xff]  ;;  %v418_v43 = vld [vmem:[#allocation2 + $0xb8] sm:$0xff]  ;;  %v419_v46 = vld [vmem:[#allocation2 + $0xc0] sm:$0xff]  ;;  %v426_v49 = vrot.slane %v224_v30, 2  ;;  %s1040_s23 = smov [#allocation5]  }
  0x40   : > { %v250_v24 = vsel %vm247_vm1, %v248_v12, %v249_v21  ;;  %v425_v41 = vsel %vm422_vm2, %v423_v33, %v424_v34  ;;  %v837_v45 = vpack.c.bf16 %v418_v43, %v417_v42  ;;  %v420_v47 = vld [vmem:[#allocation2 + $0xc8] sm:$0xff]  ;;  %v421_v50 = vld [vmem:[#allocation2 + $0xd0] sm:$0xff]  ;;  %p939_p10 = pnand %p938_p6, %p1279_p9  ;;  %s941_s28 = sshll.u32 %s1040_s23, 4  ;;  %s942_s28 = int_to_ptr.vmem [resolvable:$false] %s941_s28 }
  0x41   : > { %752 = vmatprep.mubr.msk.f32.mxu1 %vm253_vm0, %v250_v24  ;;  %804 = vmatpush3.bf16.msra.mxu1 %v801_v19  ;;  %v252_v44 = vsel %vm247_vm1, %v249_v21, %v251_v37  ;;  %v841_v48 = vpack.c.bf16 %v420_v47, %v419_v46  ;;  %v427_v51 = vsel %vm422_vm2, %v424_v34, %v426_v49  ;;  %v692_v55 = vld [vmem:[%s1266_s2] ss:$0 sm:$0xff]  ;;  %s943_s30 = scalar_lea.vmem %s942_s28, 512  ;;  %p944_p2 = scmp.lt.s32.totalorder %s1185_s8, %s942_s28 }
  0x42   : > { %824 = vmatpush3.bf16.msra.mxu0 %v821_v13  ;;  %806 = vmatprep.subr.bf16.mxu1 %v805_v23  ;;  %p940_p12 = pneg %p939_p10  ;;  %p945_p3 = scmp.lt.s32.totalorder %s943_s30, %s937_s22 }
  0x43   : > { %826 = vmatprep.subr.bf16.mxu0 %v825_v25 }
  0x44   : > { %p946_p4 = por %p945_p3, %p944_p2 }
  0x45   : > { %808 = vmatpush3.bf16.msra.mxu1 %v805_v23 }
  0x46   : > { %828 = vmatpush3.bf16.msra.mxu0 %v825_v25  ;;  %810 = vmatprep.subr.bf16.mxu1 %v809_v28  ;;  %p947_p7 = pnand %p946_p4, %p940_p12 }
  0x47   : > { %771 = vmatprep.subr.mxu0 %v233_v29 }
  0x49   : > { %812 = vmatpush3.bf16.msra.mxu1 %v809_v28 }
  0x4a   : > { %772 = vmatpush3.msra.mxu0 %v233_v29  ;;  %750 = vmatprep.subr.mxu1 %v243_v39 }
  0x4b   : > { %830 = vmatprep.subr.bf16.mxu0 %v829_v38  ;;  %774 = vmatmul.mubr.msk.f32.vlgmr.msra.gmra.mrb[0].mxu0 %vm253_vm0, %v1162_v14 }
  0x4c   : > { %832 = vmatpush3.bf16.msra.mxu0 %v829_v38  ;;  %794 = vmatprep.mubr.msk.f32.mxu0 %vm253_vm0, %v425_v41 }
  0x4d   : > { %834 = vmatprep.subr.bf16.mxu0 %v833_v40  ;;  %751 = vmatpush3.msra.mxu1 %v243_v39 }
  0x4e   : > { %753 = vmatmul.mubr.msk.f32.vlgmr.msra.gmra.mrb[0].mxu1 %vm253_vm0, %v252_v44 }
  0x50   : > { %836 = vmatpush3.bf16.msra.mxu0 %v833_v40 }
  0x51   : > { %838 = vmatprep.subr.bf16.mxu0 %v837_v45 }
  0x54   : > { %840 = vmatpush3.bf16.msra.mxu0 %v837_v45 }
  0x55   : > { %842 = vmatprep.subr.bf16.mxu0 %v841_v48 }
  0x58   : > { %844 = vmatpush3.bf16.msra.mxu0 %v841_v48 }
  0x59   : > { %792 = vmatprep.subr.mxu0 %v421_v50 }
  0x5c   : > { %793 = vmatpush3.msra.mxu0 %v421_v50 }
  0x5d   : > { %795 = vmatmul.mubr.msk.f32.vlgmr.msra.gmra.mrb[0].mxu0 %vm253_vm0, %v427_v51 }
 0x121   : > { %v754_v52 = vpop.f32.mrb[0].mxu1 }
 0x122   : > { %v324_v53 = vpop.f32.mrb[1].mxu1 }
 0x130   : > { %v796_v54 = vpop.f32.mrb[0].mxu0 }
 0x131   : > { %v845_v56 = vadd.f32 %v796_v54, %v754_v52  ;;  %v498_v57 = vpop.f32.mrb[1].mxu0 }
 0x132   : > { %v846_v58 = vadd.f32 %v498_v57, %v324_v53 }
 0x133   : > { %v517_v59 = vadd.f32 %v845_v56, %v692_v55 }
 0x134   : > { %v516_v60 = vadd.f32 %v846_v58, %v692_v55 }
 0x135   : > { %519 = vst [vmem:[%s209_s7 + $0x8] sm:$0xff] %v517_v59  ;;  %v528_v61 = vmul.f32 %v517_v59, %v517_v59 }
 0x136   : > { %518 = vst [vmem:[%s209_s7] sm:$0xff] %v516_v60  ;;  %v520_v62 = vadd.f32 %v517_v59, %v516_v60  ;;  %v527_v63 = vmul.f32 %v516_v60, %v516_v60 }
 0x137   : > { %950 = shalt.err (!%p947_p7)
}
 0x138   : > { %s951_s5 = scalar_lea.hbm %s1190_s14, 256  ;;  %s955_s7 = scalar_lea.hbm %s1267_s3, 512 }
 0x139   : > { %p952_p8 = scmp.ne.s32.totalorder %s1190_s14, %s951_s5  ;;  %p956_p1 = scmp.lt.u32.totalorder %s1190_s14, %s1267_s3 }
 0x13a   : > { %p957_p0 = scmp.lt.u32.totalorder %s955_s7, %s951_s5  ;;  %p959_p6 = scmp.lt.u32.totalorder %s951_s5, %s1190_s14 }
 0x13b   : > { %p953_p11 = pnand %p952_p8, %p1279_p9 }
 0x13c   : > { %p958_p5 = por %p957_p0, %p956_p1 }
 0x13d   : > { %p954_p13 = pneg %p953_p11 }
 0x13e   : > { %p960_p10 = por %p959_p6, %p958_p5 }
 0x140   : > { %p961_p12 = pnand %p960_p10, %p954_p13 }
 0x142   : > { %964 = shalt.err (!%p961_p12)
}
 0x143   : > { %s1041_s11 = smov 128   ;;  %s1042_s12 = smov 8   ;;  %v521_v0 = vrot.slane %v520_v62, 4  ;;  %v529_v1 = vadd.f32 %v528_v61, %v527_v63  ;;  %vm536_vm3 = vcmask 1040384  }
 0x144   : > { %854 = dma.vmem_to_hbm [thread:$0]  (%p1279_p9), %s1185_s8, 256, %s1190_s14, %s540_s20, %s1041_s11, %s1041_s11, %s1042_s12  }
 0x145   : > { %v522_v2 = vadd.f32 %v521_v0, %v520_v62  ;;  %v530_v3 = vrot.slane %v529_v1, 4  ;;  %s684_s13 = sshll.u32 %s1178_s27, 1  ;;  %s697_s22 = sshll.u32 %s1090_s19, 5 }
 0x146   : > { %s216_s23 = scalar_lea.vmem [#allocation6], %s684_s13  ;;  %s1221_s20 = scalar_lea.hbm %s1268_s4, %s697_s22 }
 0x147   : > { %v523_v4 = vrot.slane %v522_v2, 2  ;;  %v531_v5 = vadd.f32 %v530_v3, %v529_v1  ;;  %s574_s28 = sshll.u32 %s216_s23, 4  ;;  %s545_s30 = scalar_lea.sflag [#allocation7], %s1178_s27  ;;  %s1223_s28 = int_to_ptr.vmem [resolvable:$true] %s574_s28 }
 0x148   : > { %s965_s5 = scalar_lea.vmem %s1223_s28, 32  ;;  %s1043_s19 = smov [#allocation6]  }
 0x149   : > { %v524_v6 = vadd.f32 %v523_v4, %v522_v2  ;;  %v532_v7 = vrot.slane %v531_v5, 2  ;;  %p966_p2 = scmp.ne.s32.totalorder %s1223_s28, %s965_s5  ;;  %s969_s29 = sshll.u32 %s1043_s19, 4  ;;  %s970_s29 = int_to_ptr.vmem [resolvable:$false] %s969_s29 }
 0x14a   : > { %s971_s6 = scalar_lea.vmem %s970_s29, 64  ;;  %p972_p7 = scmp.lt.s32.totalorder %s1223_s28, %s970_s29 }
 0x14b   : > { %v525_v8 = vrot.slane %v524_v6, 1  ;;  %v533_v9 = vadd.f32 %v532_v7, %v531_v5  ;;  %p967_p3 = pnand %p966_p2, %p1279_p9  ;;  %p973_p8 = scmp.lt.s32.totalorder %s971_s6, %s965_s5 }
 0x14d   : > { %v534_v10 = vrot.slane %v533_v9, 1  ;;  %v526_v11 = vadd.f32 %v525_v8, %v524_v6  ;;  %p968_p4 = pneg %p967_p3  ;;  %p974_p11 = por %p973_p8, %p972_p7 }
 0x14f   : > { %v535_v12 = vadd.f32 %v534_v10, %v533_v9  ;;  %p975_p13 = pnand %p974_p11, %p968_p4 }
 0x151   : > { %v537_v13 = vsel %vm536_vm3, %v526_v11, %v535_v12 }
 0x152   : > { %538 = vst [vmem:[%s216_s23] sm:$0x3] %v537_v13 }
 0x153   : > { %978 = shalt.err (!%p975_p13)
}
 0x154   : > { %s979_s27 = scalar_lea.hbm %s1221_s20, 32  ;;  %s983_s10 = scalar_lea.hbm %s1268_s4, 64 }
 0x155   : > { %p980_p1 = scmp.ne.s32.totalorder %s1221_s20, %s979_s27  ;;  %p984_p6 = scmp.lt.u32.totalorder %s1221_s20, %s1268_s4 }
 0x156   : > { %p985_p10 = scmp.lt.u32.totalorder %s983_s10, %s979_s27  ;;  %p987_p2 = scmp.lt.u32.totalorder %s979_s27, %s1221_s20 }
 0x157   : > { %p981_p0 = pnand %p980_p1, %p1279_p9 }
 0x158   : > { %p986_p12 = por %p985_p10, %p984_p6 }
 0x159   : > { %p982_p5 = pneg %p981_p0 }
 0x15a   : > { %p988_p3 = por %p987_p2, %p986_p12 }
 0x15c   : > { %p989_p4 = pnand %p988_p3, %p982_p5 }
 0x15e   : > { %992 = shalt.err (!%p989_p4)
}
 0x15f   : > { %855 = dma.vmem_to_hbm [thread:$0]  (%p1279_p9), %s1223_s28, 32, %s1221_s20, %s545_s30  }
 0x160 PF: > { %p871_p7 = scmp.ge.s32.totalorder %s1035_s18, 2  ;;  %s586_s13 = sand.u32 1, %s1023_s15  }
 0x161   : > { %p1280_p8 = scmp.ne.s32.totalorder %s1273_s26, 0  ;;  %s587_s22 = scalar_lea.sflag [#allocation4], %s586_s13 }
 0x163   : > { %p863_p11 = pnand %p871_p7, %p1280_p8 }
 0x165   : > { %1014 = dma.done.wait (!%p863_p11), %s587_s22, 256  }
 0x166   : > { %1016 = vsyncadd (!%p863_p11), %s587_s22, 4294967040  ;;  %s596_s23 = scalar_lea.sflag [#allocation7], %s586_s13 }
 0x167   : > { %1018 = dma.done.wait (!%p863_p11), %s596_s23, 32  }
 0x168   : > { %1020 = vsyncadd (!%p863_p11), %s596_s23, 4294967264  ;;  %p19_p9 = scmp.ge.s32.totalorder %s1094_s21, 4   ;;  %s1281_s15 = smov %s1027_s16 }
 0x169   : > { %s1282_s16 = smov %s1031_s17  ;;  %s1283_s17 = smov %s1105_s24 }
 0x16a   : > { %s1284_s18 = smov %s1094_s21  ;;  %21 = sbr.rel (!%p19_p9) target bundleno = 6 (0x6), region = 91 }
 0x171   :  { %601 = vsyncpa [#allocation3], 1 }
 0x172   :  { %603 = vsyncpa [#allocation3 + $0x1], 1 }
 0x173   :  { %604 = vsyncpa [#allocation4], 1 }
 0x174   :  { %606 = vsyncpa [#allocation4 + $0x1], 1 }
 0x175   :  { %607 = vsyncpa [#allocation7], 1 }
 0x176   :  { %609 = vsyncpa [#allocation7 + $0x1], 1 }

</bundles_post_ra>
